<compile_context>
chip_gen: v7x
topology: tpu7x:2x2x1
jax: 0.10.0
libtpu: 0.0.40
codegen_flags: <defaults>
</compile_context>

<pallas_src>
import math

import jax
import jax.numpy as jnp
from jax.experimental import pallas as pl
from jax.experimental.pallas import tpu as pltpu

BN_EPS = 1e-5
B = 2          # batch
C_IN = 4       # Conv1d in_channels
L_IN = 16      # input sequence length
L3 = 4         # conv3 output length (16 -k2s1-> 15 -k1s2-> 8 -k1s2-> 4)
NUM = 64 * L3  # flattened feature size feeding fc1 (= 256)

LANES = 128
# Packed weight slab layout: name -> (row_start, rows, cols).  Every segment starts
# at a multiple of 8 rows and column 0, so all kernel-side slices are tile-aligned.
W_LAYOUT = {
    "w1":  (0,   8,   16),   # fused conv1 taps  [8, 16]
    "w2":  (8,   16,  32),   # conv2             [16, 32]
    "w3":  (24,  32,  64),   # conv3             [32, 64]
    "wf1": (56,  256, 128),  # fc1 (pre-permuted to (pos, chan) row order)
    "wf2": (312, 128, 32),   # fc2
    "wf3": (440, 32,  4),    # fc3
    "wf4": (472, 4,   2),    # fc4 (rows 476:480 are padding)
}
W_ROWS = 480
# Packed bias slab layout: name -> (row, cols) in an [8, 128] slab.
B_LAYOUT = {
    "b1": (0, 16), "b2": (1, 32), "b3": (2, 64),
    "bf1": (3, 128), "bf2": (4, 32), "bf3": (5, 4), "bf4": (6, 2),
}


def _w(w_ref, name):
    r, n, c = W_LAYOUT[name]
    return w_ref[r:r + n, 0:c]


def _b(b_ref, name):
    r, c = B_LAYOUT[name]
    return b_ref[r:r + 1, 0:c]


def cnnnet_kernel(x_ref, w_ref, b_ref, out_ref):
    f32 = jnp.float32
    bsz = out_ref.shape[0]

    # x: [L3*B, 8] rows ordered (position, batch); lanes 0:4 = x[4l], 4:8 = x[4l+1].
    x = x_ref[...]

    # conv1 (k=2,s=1; both taps fused on the channel axis) + folded BN + ReLU.
    # Only positions 0,4,8,12 are computed -- the only ones conv2/conv3 consume.
    y1 = jnp.dot(x, _w(w_ref, "w1"), preferred_element_type=f32) + _b(b_ref, "b1")
    y1 = jnp.maximum(y1, 0.0)                                     # [4B, 16]

    # conv2 (k=1,s=2) + folded BN + ReLU (stride already applied by position choice)
    y2 = jnp.dot(y1, _w(w_ref, "w2"), preferred_element_type=f32) + _b(b_ref, "b2")
    y2 = jnp.maximum(y2, 0.0)                                     # [4B, 32]

    # conv3 (k=1,s=2) + folded BN + ReLU
    y3 = jnp.dot(y2, _w(w_ref, "w3"), preferred_element_type=f32) + _b(b_ref, "b3")
    y3 = jnp.maximum(y3, 0.0)                                     # [4B, 64]

    # Flatten: rows are position-major, so per-position slices are contiguous;
    # lane-concatenate them into [B, 256] in (pos, chan) order, which matches the
    # pre-permuted fc1 weight rows.  fc1 is then a single 256-deep dot.
    flat = jnp.concatenate(
        [y3[m * bsz:(m + 1) * bsz, :] for m in range(L3)], axis=-1)  # [B, 256]

    def leaky(v):  # F.leaky_relu, default negative_slope = 0.01
        return jnp.where(v >= 0.0, v, 0.01 * v)

    # dropout(p=0.4) == identity in eval mode
    h = leaky(jnp.dot(flat, _w(w_ref, "wf1"), preferred_element_type=f32) + _b(b_ref, "bf1"))  # [B,128]
    h = leaky(jnp.dot(h, _w(w_ref, "wf2"), preferred_element_type=f32) + _b(b_ref, "bf2"))     # [B, 32]
    h = leaky(jnp.dot(h, _w(w_ref, "wf3"), preferred_element_type=f32) + _b(b_ref, "bf3"))     # [B,  4]
    logits = jnp.dot(h, _w(w_ref, "wf4"), preferred_element_type=f32) + _b(b_ref, "bf4")       # [B,  2]

    mx = jnp.max(logits, axis=-1, keepdims=True)
    e = jnp.exp(logits - mx)
    out_ref[...] = e / jnp.sum(e, axis=-1, keepdims=True)         # softmax over dim=1


@jax.jit
def cnnnet_forward(x_ncl, params):
    # Glue: PyTorch NCL -> channels-last, keep only the x pairs (4l, 4l+1) that the
    # downstream strides consume, fuse the two conv1 taps on the channel axis and
    # lay rows out position-major / batch-minor.
    b = x_ncl.shape[0]
    x_blc = jnp.transpose(x_ncl, (0, 2, 1)).astype(jnp.float32)   # [B, L, C]
    xe = x_blc[:, 0:L_IN:4, :]                                    # [B, 4, 4]  x[4l]
    xo = x_blc[:, 1:L_IN:4, :]                                    # [B, 4, 4]  x[4l+1]
    x12 = jnp.concatenate([xe, xo], axis=-1)                      # [B, 4, 8]
    x12 = jnp.transpose(x12, (1, 0, 2)).reshape(L3 * b, 2 * C_IN)  # [4B, 8] rows (l, b)

    vmem = pl.BlockSpec(memory_space=pltpu.MemorySpace.VMEM)
    return pl.pallas_call(
        cnnnet_kernel,
        out_shape=jax.ShapeDtypeStruct((b, 2), jnp.float32),
        in_specs=[vmem, vmem, vmem],
        out_specs=vmem,
    )(x12, params["w"], params["b"])


def init_params(key):
    ks = jax.random.split(key, 14)

    def uni(k, shape, fan_in):  # PyTorch-style U(-1/sqrt(fan_in), 1/sqrt(fan_in))
        bound = 1.0 / math.sqrt(fan_in)
        return jax.random.uniform(k, shape, jnp.float32, -bound, bound)

    def fold_bn(w, b, gamma, beta, mean, var):
        s = gamma / jnp.sqrt(var + BN_EPS)
        return w * s[:, None, None], (b - mean) * s + beta

    # conv1: Conv1d(4, 16, k=2) + BatchNorm1d(16) (default BN init / running stats)
    w1 = uni(ks[0], (16, 4, 2), 4 * 2)
    b1 = uni(ks[1], (16,), 4 * 2)
    w1, b1 = fold_bn(w1, b1, jnp.ones(16), jnp.zeros(16), jnp.zeros(16), jnp.ones(16))
    # conv2: Conv1d(16, 32, k=1, s=2) + BatchNorm1d(32)
    w2 = uni(ks[2], (32, 16, 1), 16)
    b2 = uni(ks[3], (32,), 16)
    w2, b2 = fold_bn(w2, b2, jnp.ones(32), jnp.zeros(32), jnp.zeros(32), jnp.ones(32))
    # conv3: Conv1d(32, 64, k=1, s=2) + BatchNorm1d(64)
    w3 = uni(ks[4], (64, 32, 1), 32)
    b3 = uni(ks[5], (64,), 32)
    w3, b3 = fold_bn(w3, b3, jnp.ones(64), jnp.zeros(64), jnp.zeros(64), jnp.ones(64))

    # Linear layers, PyTorch weight layout [out, in]
    wf1_t = uni(ks[6], (NUM // 2, NUM), NUM)             # [128, 256]
    bf1 = uni(ks[7], (NUM // 2,), NUM)
    wf2_t = uni(ks[8], (NUM // 8, NUM // 2), NUM // 2)   # [32, 128]
    bf2 = uni(ks[9], (NUM // 8,), NUM // 2)
    wf3_t = uni(ks[10], (NUM // 64, NUM // 8), NUM // 8)  # [4, 32]
    bf3 = uni(ks[11], (NUM // 64,), NUM // 8)
    wf4_t = uni(ks[12], (2, NUM // 64), NUM // 64)        # [2, 4]
    bf4 = uni(ks[13], (2,), NUM // 64)

    # Raw PyTorch-layout (BN already folded) params for the pure-JAX reference.
    raw = dict(w1=w1, b1=b1, w2=w2, b2=b2, w3=w3, b3=b3,
               wf1=wf1_t, bf1=bf1, wf2=wf2_t, bf2=bf2,
               wf3=wf3_t, bf3=bf3, wf4=wf4_t, bf4=bf4)

    # Kernel-layout weights:
    #  - conv taps as [C_in, C_out]; conv1's two taps stacked -> [8, 16]
    #  - fc1: PyTorch flattens NCL as c*L3 + l; the kernel consumes (l, c) order,
    #    so permute fc1 columns accordingly (same function, different storage).
    w1_fused = jnp.concatenate([w1[:, :, 0].T, w1[:, :, 1].T], axis=0)           # [8, 16]
    wf1_perm = jnp.transpose(wf1_t.reshape(NUM // 2, 64, L3), (2, 1, 0)).reshape(NUM, NUM // 2)

    kern_w = {"w1": w1_fused, "w2": w2[:, :, 0].T, "w3": w3[:, :, 0].T,
              "wf1": wf1_perm, "wf2": wf2_t.T, "wf3": wf3_t.T, "wf4": wf4_t.T}
    kern_b = {"b1": b1, "b2": b2, "b3": b3,
              "bf1": bf1, "bf2": bf2, "bf3": bf3, "bf4": bf4}

    # Pack everything into one weight slab and one bias slab (3 DMAs total per call).
    wslab = jnp.zeros((W_ROWS, LANES), jnp.float32)
    for name, w in kern_w.items():
        r, n, c = W_LAYOUT[name]
        assert w.shape == (n, c), (name, w.shape)
        wslab = wslab.at[r:r + n, 0:c].set(w)

    bslab = jnp.zeros((8, LANES), jnp.float32)
    for name, bb in kern_b.items():
        r, c = B_LAYOUT[name]
        assert bb.shape == (c,), (name, bb.shape)
        bslab = bslab.at[r, 0:c].set(bb)

    return {"w": wslab, "b": bslab}, raw


def _reference_forward(x_ncl, raw):
    """Pure-JAX reference of the full PyTorch forward (eval mode, BN folded)."""
    hp = jax.lax.Precision.HIGHEST
    x = x_ncl.astype(jnp.float32)

    def conv1d(x, w, b, stride):
        B_, Cin, L = x.shape
        Cout, _, K = w.shape
        Lout = (L - K) // stride + 1
        cols = jnp.stack([x[:, :, l * stride:l * stride + K] for l in range(Lout)], axis=-1)
        return jnp.einsum("bckl,ock->bol", cols, w, precision=hp) + b[None, :, None]

    y = jnp.maximum(conv1d(x, raw["w1"], raw["b1"], 1), 0.0)
    y = jnp.maximum(conv1d(y, raw["w2"], raw["b2"], 2), 0.0)
    y = jnp.maximum(conv1d(y, raw["w3"], raw["b3"], 2), 0.0)
    h = y.reshape(y.shape[0], -1)                                  # PyTorch NCL flatten

    def leaky(v):
        return jnp.where(v >= 0.0, v, 0.01 * v)

    h = leaky(jnp.dot(h, raw["wf1"].T, precision=hp) + raw["bf1"])
    h = leaky(jnp.dot(h, raw["wf2"].T, precision=hp) + raw["bf2"])
    h = leaky(jnp.dot(h, raw["wf3"].T, precision=hp) + raw["bf3"])
    logits = jnp.dot(h, raw["wf4"].T, precision=hp) + raw["bf4"]
    return jax.nn.softmax(logits, axis=1)


if __name__ == "__main__":
    key = jax.random.PRNGKey(0)
    pkey, xkey = jax.random.split(key)
    params, raw = init_params(pkey)
    x = jax.random.normal(xkey, (B, C_IN, L_IN), jnp.float32)   # PyTorch NCL input

    out = jax.block_until_ready(cnnnet_forward(x, params))
    assert out.shape == (B, 2)
    assert bool(jnp.all(jnp.isfinite(out)))
    assert bool(jnp.allclose(jnp.sum(out, axis=-1), 1.0, atol=1e-5))  # softmax rows sum to 1

    # Structural-correctness check against the full (no-shortcut) reference.
    # Loose tolerance only accounts for MXU pass-precision differences; any
    # ordering/stride bug would produce O(0.1) discrepancies.
    ref = jax.block_until_ready(_reference_forward(x, raw))
    assert bool(jnp.allclose(out, ref, atol=2e-3)), (out, ref)

    print("KERNEL_OK")
</pallas_src>

<mosaic_0001>
module attributes {stable_mosaic.version = 11 : i64} {
  func.func @cnnnet_kernel(%arg0: memref<8x8xf32, #tpu.memory_space<vmem>>, %arg1: memref<480x128xf32, #tpu.memory_space<vmem>>, %arg2: memref<8x128xf32, #tpu.memory_space<vmem>>, %arg3: memref<2x2xf32, #tpu.memory_space<vmem>>) attributes {dimension_semantics = [], scalar_prefetch = 0 : i64, scratch_operands = 0 : i64, tpu.core_type = #tpu.core_type<tc>} {
    %c0 = arith.constant 0 : index
    %c0_0 = arith.constant 0 : index
    %0 = vector.load %arg0[%c0, %c0_0] : memref<8x8xf32, #tpu.memory_space<vmem>>, vector<8x8xf32>
    %c0_1 = arith.constant 0 : index
    %c0_2 = arith.constant 0 : index
    %1 = vector.load %arg1[%c0_1, %c0_2] : memref<480x128xf32, #tpu.memory_space<vmem>>, vector<8x16xf32>
    %cst = arith.constant dense<0.000000e+00> : vector<8x16xf32>
    %2 = tpu.matmul %0, %1, %cst {dimension_numbers = #tpu.dot_dimension_numbers<[1], [0], [0], [1], [0, 0, 1, 1], [], []>} : vector<8x8xf32>, vector<8x16xf32>, vector<8x16xf32> -> vector<8x16xf32>
    %c0_3 = arith.constant 0 : index
    %c0_4 = arith.constant 0 : index
    %3 = vector.load %arg2[%c0_3, %c0_4] : memref<8x128xf32, #tpu.memory_space<vmem>>, vector<1x16xf32>
    %4 = vector.broadcast %3 : vector<1x16xf32> to vector<8x16xf32>
    %5 = arith.addf %2, %4 : vector<8x16xf32>
    %cst_5 = arith.constant 0.000000e+00 : f32
    %6 = vector.broadcast %cst_5 : f32 to vector<8x16xf32>
    %7 = arith.maximumf %5, %6 : vector<8x16xf32>
    %c8 = arith.constant 8 : index
    %c0_6 = arith.constant 0 : index
    %8 = vector.load %arg1[%c8, %c0_6] : memref<480x128xf32, #tpu.memory_space<vmem>>, vector<16x32xf32>
    %cst_7 = arith.constant dense<0.000000e+00> : vector<8x32xf32>
    %9 = tpu.matmul %7, %8, %cst_7 {dimension_numbers = #tpu.dot_dimension_numbers<[1], [0], [0], [1], [0, 0, 1, 1], [], []>} : vector<8x16xf32>, vector<16x32xf32>, vector<8x32xf32> -> vector<8x32xf32>
    %c1 = arith.constant 1 : index
    %c0_8 = arith.constant 0 : index
    %10 = vector.load %arg2[%c1, %c0_8] : memref<8x128xf32, #tpu.memory_space<vmem>>, vector<1x32xf32>
    %11 = vector.broadcast %10 : vector<1x32xf32> to vector<8x32xf32>
    %12 = arith.addf %9, %11 : vector<8x32xf32>
    %cst_9 = arith.constant 0.000000e+00 : f32
    %13 = vector.broadcast %cst_9 : f32 to vector<8x32xf32>
    %14 = arith.maximumf %12, %13 : vector<8x32xf32>
    %c24 = arith.constant 24 : index
    %c0_10 = arith.constant 0 : index
    %15 = vector.load %arg1[%c24, %c0_10] : memref<480x128xf32, #tpu.memory_space<vmem>>, vector<32x64xf32>
    %cst_11 = arith.constant dense<0.000000e+00> : vector<8x64xf32>
    %16 = tpu.matmul %14, %15, %cst_11 {dimension_numbers = #tpu.dot_dimension_numbers<[1], [0], [0], [1], [0, 0, 1, 1], [], []>} : vector<8x32xf32>, vector<32x64xf32>, vector<8x64xf32> -> vector<8x64xf32>
    %c2 = arith.constant 2 : index
    %c0_12 = arith.constant 0 : index
    %17 = vector.load %arg2[%c2, %c0_12] : memref<8x128xf32, #tpu.memory_space<vmem>>, vector<1x64xf32>
    %18 = vector.broadcast %17 : vector<1x64xf32> to vector<8x64xf32>
    %19 = arith.addf %16, %18 : vector<8x64xf32>
    %cst_13 = arith.constant 0.000000e+00 : f32
    %20 = vector.broadcast %cst_13 : f32 to vector<8x64xf32>
    %21 = arith.maximumf %19, %20 : vector<8x64xf32>
    %22 = vector.extract_strided_slice %21 {offsets = [0, 0], sizes = [2, 64], strides = [1, 1]} : vector<8x64xf32> to vector<2x64xf32>
    %23 = vector.extract_strided_slice %21 {offsets = [2, 0], sizes = [2, 64], strides = [1, 1]} : vector<8x64xf32> to vector<2x64xf32>
    %24 = vector.extract_strided_slice %21 {offsets = [4, 0], sizes = [2, 64], strides = [1, 1]} : vector<8x64xf32> to vector<2x64xf32>
    %25 = vector.extract_strided_slice %21 {offsets = [6, 0], sizes = [2, 64], strides = [1, 1]} : vector<8x64xf32> to vector<2x64xf32>
    %26 = tpu.concatenate %22, %23, %24, %25 in 1 : vector<2x64xf32>, vector<2x64xf32>, vector<2x64xf32>, vector<2x64xf32> -> vector<2x256xf32>
    %c56 = arith.constant 56 : index
    %c0_14 = arith.constant 0 : index
    %27 = vector.load %arg1[%c56, %c0_14] : memref<480x128xf32, #tpu.memory_space<vmem>>, vector<256x128xf32>
    %cst_15 = arith.constant dense<0.000000e+00> : vector<2x128xf32>
    %28 = tpu.matmul %26, %27, %cst_15 {dimension_numbers = #tpu.dot_dimension_numbers<[1], [0], [0], [1], [0, 0, 1, 1], [], []>} : vector<2x256xf32>, vector<256x128xf32>, vector<2x128xf32> -> vector<2x128xf32>
    %c3 = arith.constant 3 : index
    %c0_16 = arith.constant 0 : index
    %29 = vector.load %arg2[%c3, %c0_16] : memref<8x128xf32, #tpu.memory_space<vmem>>, vector<1x128xf32>
    %30 = vector.broadcast %29 : vector<1x128xf32> to vector<2x128xf32>
    %31 = arith.addf %28, %30 : vector<2x128xf32>
    %cst_17 = arith.constant 0.000000e+00 : f32
    %32 = vector.broadcast %cst_17 : f32 to vector<2x128xf32>
    %33 = arith.cmpf oge, %31, %32 : vector<2x128xf32>
    %cst_18 = arith.constant 0.00999999977 : f32
    %34 = vector.broadcast %cst_18 : f32 to vector<2x128xf32>
    %35 = arith.mulf %34, %31 : vector<2x128xf32>
    %36 = arith.select %33, %31, %35 : vector<2x128xi1>, vector<2x128xf32>
    %c312 = arith.constant 312 : index
    %c0_19 = arith.constant 0 : index
    %37 = vector.load %arg1[%c312, %c0_19] : memref<480x128xf32, #tpu.memory_space<vmem>>, vector<128x32xf32>
    %cst_20 = arith.constant dense<0.000000e+00> : vector<2x32xf32>
    %38 = tpu.matmul %36, %37, %cst_20 {dimension_numbers = #tpu.dot_dimension_numbers<[1], [0], [0], [1], [0, 0, 1, 1], [], []>} : vector<2x128xf32>, vector<128x32xf32>, vector<2x32xf32> -> vector<2x32xf32>
    %c4 = arith.constant 4 : index
    %c0_21 = arith.constant 0 : index
    %39 = vector.load %arg2[%c4, %c0_21] : memref<8x128xf32, #tpu.memory_space<vmem>>, vector<1x32xf32>
    %40 = vector.broadcast %39 : vector<1x32xf32> to vector<2x32xf32>
    %41 = arith.addf %38, %40 : vector<2x32xf32>
    %cst_22 = arith.constant 0.000000e+00 : f32
    %42 = vector.broadcast %cst_22 : f32 to vector<2x32xf32>
    %43 = arith.cmpf oge, %41, %42 : vector<2x32xf32>
    %cst_23 = arith.constant 0.00999999977 : f32
    %44 = vector.broadcast %cst_23 : f32 to vector<2x32xf32>
    %45 = arith.mulf %44, %41 : vector<2x32xf32>
    %46 = arith.select %43, %41, %45 : vector<2x32xi1>, vector<2x32xf32>
    %c440 = arith.constant 440 : index
    %c0_24 = arith.constant 0 : index
    %47 = vector.load %arg1[%c440, %c0_24] : memref<480x128xf32, #tpu.memory_space<vmem>>, vector<32x4xf32>
    %cst_25 = arith.constant dense<0.000000e+00> : vector<2x4xf32>
    %48 = tpu.matmul %46, %47, %cst_25 {dimension_numbers = #tpu.dot_dimension_numbers<[1], [0], [0], [1], [0, 0, 1, 1], [], []>} : vector<2x32xf32>, vector<32x4xf32>, vector<2x4xf32> -> vector<2x4xf32>
    %c5 = arith.constant 5 : index
    %c0_26 = arith.constant 0 : index
    %49 = vector.load %arg2[%c5, %c0_26] : memref<8x128xf32, #tpu.memory_space<vmem>>, vector<1x4xf32>
    %50 = vector.broadcast %49 : vector<1x4xf32> to vector<2x4xf32>
    %51 = arith.addf %48, %50 : vector<2x4xf32>
    %cst_27 = arith.constant 0.000000e+00 : f32
    %52 = vector.broadcast %cst_27 : f32 to vector<2x4xf32>
    %53 = arith.cmpf oge, %51, %52 : vector<2x4xf32>
    %cst_28 = arith.constant 0.00999999977 : f32
    %54 = vector.broadcast %cst_28 : f32 to vector<2x4xf32>
    %55 = arith.mulf %54, %51 : vector<2x4xf32>
    %56 = arith.select %53, %51, %55 : vector<2x4xi1>, vector<2x4xf32>
    %c472 = arith.constant 472 : index
    %c0_29 = arith.constant 0 : index
    %57 = vector.load %arg1[%c472, %c0_29] : memref<480x128xf32, #tpu.memory_space<vmem>>, vector<4x2xf32>
    %cst_30 = arith.constant dense<0.000000e+00> : vector<2x2xf32>
    %58 = tpu.matmul %56, %57, %cst_30 {dimension_numbers = #tpu.dot_dimension_numbers<[1], [0], [0], [1], [0, 0, 1, 1], [], []>} : vector<2x4xf32>, vector<4x2xf32>, vector<2x2xf32> -> vector<2x2xf32>
    %c6 = arith.constant 6 : index
    %c0_31 = arith.constant 0 : index
    %59 = vector.load %arg2[%c6, %c0_31] : memref<8x128xf32, #tpu.memory_space<vmem>>, vector<1x2xf32>
    %60 = vector.broadcast %59 : vector<1x2xf32> to vector<2x2xf32>
    %61 = arith.addf %58, %60 : vector<2x2xf32>
    %cst_32 = arith.constant dense<0xFF800000> : vector<2xf32>
    %62 = vector.multi_reduction <maximumf>, %61, %cst_32 [1] : vector<2x2xf32> to vector<2xf32>
    %63 = vector.shape_cast %62 : vector<2xf32> to vector<2x1xf32>
    %64 = vector.broadcast %63 : vector<2x1xf32> to vector<2x2xf32>
    %65 = arith.subf %61, %64 : vector<2x2xf32>
    %66 = math.exp %65 : vector<2x2xf32>
    %cst_33 = arith.constant dense<0.000000e+00> : vector<2xf32>
    %67 = vector.multi_reduction <add>, %66, %cst_33 [1] : vector<2x2xf32> to vector<2xf32>
    %68 = vector.shape_cast %67 : vector<2xf32> to vector<2x1xf32>
    %69 = vector.broadcast %68 : vector<2x1xf32> to vector<2x2xf32>
    %70 = arith.divf %66, %69 : vector<2x2xf32>
    %c0_34 = arith.constant 0 : index
    %c0_35 = arith.constant 0 : index
    %71 = vector.load %arg3[%c0_34, %c0_35] : memref<2x2xf32, #tpu.memory_space<vmem>>, vector<2x2xf32>
    tpu.vector_store %arg3[%c0_34, %c0_35], %70 {strides = array<i32>} : memref<2x2xf32, #tpu.memory_space<vmem>>, vector<2x2xf32>,
    return
  }
}

</mosaic_0001>

<bundles_post_ra>
// kernel: cnnnet_forward.1
= control target key start
LH: loop header
LB: loop body
LE: loop exit
PB: predicated region body
PF: predicated region fallthrough
CT: control target
= control target key end

     0   :  { %8 = vsyncpa [#allocation3], 0  ;;  %s1092_s0 = inlined_call_operand.vmem [shape: f32[8,8], index: 0, kind: input, shape index: {}]   ;;  %s1093_s1 = inlined_call_operand.hbm [shape: f32[480,128], index: 1, kind: input, shape index: {}]   ;;  %s1094_s2 = inlined_call_operand.vmem [shape: f32[8,128], index: 2, kind: input, shape index: {}]   ;;  %s1095_s3 = inlined_call_operand.hbm [shape: f32[2,2], index: 3, kind: output, shape index: {}]  }
   0x1   :  { %9 = vsyncpa [#allocation4], 0  ;;  %s984_s12 = smov [#allocation2]   ;;  %s936_s16 = scalar_lea.hbm %s1093_s1, 7680 }
   0x2   :  { %s17_s13 = sshll.u32 %s984_s12, 4  ;;  %p937_p0 = scmp.ne.s32.totalorder %s1093_s1, %s936_s16  ;;  %s18_s13 = int_to_ptr.vmem [resolvable:$true] %s17_s13 }
   0x3   :  { %p940_p1 = scmp.lt.u32.totalorder %s936_s16, %s1093_s1 }
   0x5   :  { %p942_p2 = pnand %p940_p1, %p937_p0 }
   0x7   :  { %945 = shalt.err (!%p942_p2)
}
   0x8   :  { %s946_s21 = scalar_lea.vmem %s18_s13, 7680  ;;  %p951_p4 = scmp.lt.s32.totalorder %s18_s13, %s18_s13 }
   0x9   :  { %p947_p3 = scmp.ne.s32.totalorder %s18_s13, %s946_s21  ;;  %p952_p5 = scmp.lt.s32.totalorder %s946_s21, %s946_s21 }
   0xb   :  { %p953_p6 = por %p952_p5, %p951_p4 }
   0xd   :  { %p954_p7 = pnand %p953_p6, %p947_p3 }
   0xf   :  { %957 = shalt.err (!%p954_p7)
}
  0x10   :  { %s985_s22 = smov 128   ;;  %s986_s23 = smov 8  }
  0x11   :  { %23 = dma.hbm_to_vmem [thread:$0]  %s1093_s1, 7680, %s18_s13, [#allocation3], %s985_s22, %s985_s22, %s986_s23  }
  0x12   :  { %980 = dma.done.wait [#allocation3], 7680  }
  0x13   :  { %981 = vsyncadd [#allocation3], 4294959616  ;;  %v987_v0 = vmov 0.0   ;;  %vm988_vm0 = vmmov 0   ;;  %vm36_vm1 = vcmask 64512   ;;  %v30_v1 = vld [vmem:[#allocation2] sm:$0xff] }
  0x14   :  { %774 = vmatprep.subr.mxu0 %v987_v0  ;;  %776 = vmatprep.mubr.msk.f32.mxu0 %vm988_vm0, %v987_v0  ;;  %v29_v2 = vld [vmem:[%s1092_s0] sm:$0xff]  ;;  %v111_v3 = vld [vmem:[#allocation2 + $0x8] sm:$0xff]  ;;  %v112_v4 = vld [vmem:[#allocation2 + $0x10] sm:$0xff]  ;;  %v989_v6 = vmov 0.0|0.0   ;;  %vm118_vm2 = vcmask 130048   ;;  %vm202_vm3 = vcmask 261120  }
  0x15   :  { %783 = vmatprep.mubr.msk.f32.mxu1 %vm988_vm0, %v987_v0  ;;  %775 = vmatpush3.msra.mxu0 %v30_v1  ;;  %v849_v5 = vpack.c.bf16 %v112_v4, %v111_v3  ;;  %v193_v7 = vld [vmem:[#allocation2 + $0x18] sm:$0xff]  ;;  %v194_v8 = vld [vmem:[#allocation2 + $0x20] sm:$0xff]  ;;  %v195_v15 = vld [vmem:[#allocation2 + $0x28] sm:$0xff]  ;;  %s990_s5 = smov 64   ;;  %vm288_vm4 = vcmask 523264   ;;  %vm590_vm7 = vcmask 1043456  }
  0x16   :  { %777 = vmatmul.mubr.msk.f32.vlgmr.msra.gmra.mrb[0].mxu0 %vm36_vm1, %v29_v2  ;;  %848 = vmatprep.subr.bf16.mxu1 %v989_v6  ;;  %v852_v9 = vpack.c.bf16 %v194_v8, %v193_v7  ;;  %v692_v10 = vld [vmem:[%s1094_s2] ss:$0 sm:$0xff]  ;;  %v196_v16 = vld [vmem:[#allocation2 + $0x30] sm:$0xff]  ;;  %v694_v18 = vld [vmem:[%s1094_s2 + $0x1] ss:$0 sm:$0xff]  ;;  %vm586_vm9 = vcmask 31744  }
  0x17   :  { %794 = vmatprep.mubr.msk.f32.mxu0 %vm988_vm0, %v987_v0  ;;  %851 = vmatprep.subr.bf16.mxu0 %v989_v6  ;;  %v855_v17 = vpack.c.bf16 %v196_v16, %v195_v15  ;;  %v307_v23 = vld [vmem:[#allocation2 + $0xb8] sm:$0xff]  ;;  %v308_v24 = vld [vmem:[#allocation2 + $0xc0] sm:$0xff]  ;;  %v309_v28 = vld [vmem:[#allocation2 + $0xc8] sm:$0xff]  ;;  %vm664_vm10 = vcmask 9216   ;;  %s991_s14 = smov [#allocation5]  }
  0x18   :  { %850 = vmatpush3.bf16.msra.mxu1 %v849_v5  ;;  %853 = vmatpush3.bf16.msra.mxu0 %v852_v9  ;;  %v291_v25 = vld [vmem:[#allocation2 + $0x38] sm:$0xff]  ;;  %v857_v26 = vpack.c.bf16 %v308_v24, %v307_v23  ;;  %v292_v27 = vld [vmem:[#allocation2 + $0x40] sm:$0xff]  ;;  %v310_v29 = vld [vmem:[#allocation2 + $0xd0] sm:$0xff]  ;;  %s683_s15 = sshll.u32 %s991_s14, 4  ;;  %s684_s15 = int_to_ptr.vmem [resolvable:$true] %s683_s15 }
  0x19   :  { %854 = vmatprep.subr.bf16.mxu0 %v989_v6  ;;  %v859_v30 = vpack.c.bf16 %v292_v27, %v291_v25  ;;  %v861_v31 = vpack.c.bf16 %v310_v29, %v309_v28  ;;  %v293_v32 = vld [vmem:[#allocation2 + $0x48] sm:$0xff]  ;;  %v294_v33 = vld [vmem:[#allocation2 + $0x50] sm:$0xff]  ;;  %v311_v34 = vld [vmem:[#allocation2 + $0xd8] sm:$0xff]  ;;  %p963_p9 = scmp.lt.s32.totalorder %s684_s15, %s684_s15 }
  0x1a   :  { %858 = vmatprep.subr.bf16.mxu1 %v857_v26  ;;  %v312_v35 = vld [vmem:[#allocation2 + $0xe0] sm:$0xff]  ;;  %v863_v36 = vpack.c.bf16 %v294_v33, %v293_v32  ;;  %v295_v38 = vld [vmem:[#allocation2 + $0x58] sm:$0xff]  ;;  %v313_v40 = vld [vmem:[#allocation2 + $0xe8] sm:$0xff] }
  0x1b   :  { %v865_v37 = vpack.c.bf16 %v312_v35, %v311_v34  ;;  %v296_v39 = vld [vmem:[#allocation2 + $0x60] sm:$0xff]  ;;  %v314_v41 = vld [vmem:[#allocation2 + $0xf0] sm:$0xff]  ;;  %v297_v44 = vld [vmem:[#allocation2 + $0x68] sm:$0xff] }
  0x1c   :  { %856 = vmatpush3.bf16.msra.mxu0 %v855_v17  ;;  %v867_v42 = vpack.c.bf16 %v296_v39, %v295_v38  ;;  %v869_v43 = vpack.c.bf16 %v314_v41, %v313_v40  ;;  %v298_v45 = vld [vmem:[#allocation2 + $0x70] sm:$0xff]  ;;  %v315_v46 = vld [vmem:[#allocation2 + $0xf8] sm:$0xff]  ;;  %v316_v47 = vld [vmem:[#allocation2 + $0x100] sm:$0xff] }
  0x1d   :  { %889 = vmatprep.subr.bf16.mxu0 %v989_v6  ;;  %v871_v48 = vpack.c.bf16 %v298_v45, %v297_v44  ;;  %v873_v49 = vpack.c.bf16 %v316_v47, %v315_v46  ;;  %v299_v50 = vld [vmem:[#allocation2 + $0x78] sm:$0xff]  ;;  %v300_v51 = vld [vmem:[#allocation2 + $0x80] sm:$0xff]  ;;  %v317_v52 = vld [vmem:[#allocation2 + $0x108] sm:$0xff] }
  0x1e   :  { %v318_v53 = vld [vmem:[#allocation2 + $0x110] sm:$0xff]  ;;  %v875_v54 = vpack.c.bf16 %v300_v51, %v299_v50  ;;  %v301_v56 = vld [vmem:[#allocation2 + $0x88] sm:$0xff]  ;;  %v319_v58 = vld [vmem:[#allocation2 + $0x118] sm:$0xff] }
  0x1f   :  { %v877_v55 = vpack.c.bf16 %v318_v53, %v317_v52  ;;  %v302_v57 = vld [vmem:[#allocation2 + $0x90] sm:$0xff]  ;;  %v320_v59 = vld [vmem:[#allocation2 + $0x120] sm:$0xff]  ;;  %v303_v62 = vld [vmem:[#allocation2 + $0x98] sm:$0xff] }
  0x20   :  { %v879_v60 = vpack.c.bf16 %v302_v57, %v301_v56  ;;  %v881_v61 = vpack.c.bf16 %v320_v59, %v319_v58  ;;  %v304_v63 = vld [vmem:[#allocation2 + $0xa0] sm:$0xff]  ;;  %v321_v2 = vld [vmem:[#allocation2 + $0x128] sm:$0xff]  ;;  %v322_v3 = vld [vmem:[#allocation2 + $0x130] sm:$0xff] }
  0x21   :  { %v883_v1 = vpack.c.bf16 %v304_v63, %v303_v62  ;;  %v885_v4 = vpack.c.bf16 %v322_v3, %v321_v2  ;;  %v305_v5 = vld [vmem:[#allocation2 + $0xa8] sm:$0xff]  ;;  %v306_v7 = vld [vmem:[#allocation2 + $0xb0] sm:$0xff]  ;;  %v696_v9 = vld [vmem:[%s1094_s2 + $0x2] ss:$0 sm:$0xff] }
  0x22   :  { %v887_v8 = vpack.c.bf16 %v306_v7, %v305_v5  ;;  %v404_v17 = vld [vmem:[#allocation2 + $0x150] sm:$0xff]  ;;  %v407_v26 = vld [vmem:[#allocation2 + $0x168] sm:$0xff]  ;;  %v409_v29 = vld [vmem:[#allocation2 + $0x178] sm:$0xff] }
  0x23   :  { %v408_v27 = vld [vmem:[#allocation2 + $0x170] sm:$0xff]  ;;  %v411_v32 = vld [vmem:[#allocation2 + $0x188] sm:$0xff]  ;;  %v413_v41 = vld [vmem:[#allocation2 + $0x198] sm:$0xff] }
  0x24   :  { %v899_v28 = vpack.c.bf16 %v408_v27, %v407_v26  ;;  %v412_v33 = vld [vmem:[#allocation2 + $0x190] sm:$0xff]  ;;  %v415_v44 = vld [vmem:[#allocation2 + $0x1a8] sm:$0xff]  ;;  %v495_v47 = vld [vmem:[#allocation2 + $0x1b8] sm:$0xff] }
  0x25   :  { %v905_v34 = vpack.c.bf16 %v412_v33, %v411_v32  ;;  %v416_v45 = vld [vmem:[#allocation2 + $0x1b0] sm:$0xff]  ;;  %v698_v51 = vld [vmem:[%s1094_s2 + $0x3] ss:$0 sm:$0xff]  ;;  %v497_v57 = vld [vmem:[#allocation2 + $0x1c8] sm:$0xff] }
  0x26   :  { %v911_v46 = vpack.c.bf16 %v416_v45, %v415_v44  ;;  %v498_v58 = vld [vmem:[#allocation2 + $0x1d0] sm:$0xff]  ;;  %v580_v2 = vld [vmem:[#allocation2 + $0x1d8] sm:$0xf] }
  0x27   :  { %v917_v59 = vpack.c.bf16 %v498_v58, %v497_v57 }
  0xe9   :  { %v106_v11 = vpop.f32.mrb[0].mxu0 }
  0xea   :  { %v107_v12 = vadd.f32 %v692_v10, %v106_v11  ;;  %v778_v13 = vpop.f32.mrb[1].mxu0  ;;  %v401_v11 = vld [vmem:[#allocation2 + $0x138] sm:$0xff] }
  0xeb   :  { %v403_v13 = vld [vmem:[#allocation2 + $0x148] sm:$0xff] }
  0xec   :  { %v110_v14 = vmax.f32 %v107_v12, 0.0  ;;  %v402_v12 = vld [vmem:[#allocation2 + $0x140] sm:$0xff] }
  0xed   :  { %v890_v16 = vpack.c.bf16 %v402_v12, %v401_v11 }
  0xee   :  { %784 = vmatmul.mubr.msk.f32.vlgmr.msra.gmra.mrb[0].mxu1 %vm118_vm2, %v110_v14 }
  0xef   :  { %860 = vmatpush3.bf16.msra.mxu1 %v859_v30  ;;  %v410_v30 = vld [vmem:[#allocation2 + $0x180] sm:$0xff] }
  0xf0   :  { %862 = vmatprep.subr.bf16.mxu1 %v861_v31  ;;  %v902_v31 = vpack.c.bf16 %v410_v30, %v409_v29 }
  0xf3   :  { %864 = vmatpush3.bf16.msra.mxu1 %v863_v36 }
  0xf4   :  { %866 = vmatprep.subr.bf16.mxu1 %v865_v37 }
  0xf7   :  { %868 = vmatpush3.bf16.msra.mxu1 %v867_v42  ;;  %v414_v42 = vld [vmem:[#allocation2 + $0x1a0] sm:$0xff] }
  0xf8   :  { %870 = vmatprep.subr.bf16.mxu1 %v869_v43  ;;  %v908_v43 = vpack.c.bf16 %v414_v42, %v413_v41 }
  0xfb   :  { %872 = vmatpush3.bf16.msra.mxu1 %v871_v48  ;;  %v496_v48 = vld [vmem:[#allocation2 + $0x1c0] sm:$0xff] }
  0xfc   :  { %874 = vmatprep.subr.bf16.mxu1 %v873_v49  ;;  %v914_v49 = vpack.c.bf16 %v496_v48, %v495_v47 }
  0xff   :  { %876 = vmatpush3.bf16.msra.mxu1 %v875_v54 }
 0x100   :  { %878 = vmatprep.subr.bf16.mxu1 %v877_v55 }
 0x103   :  { %880 = vmatpush3.bf16.msra.mxu1 %v879_v60 }
 0x104   :  { %882 = vmatprep.subr.bf16.mxu1 %v881_v61 }
 0x107   :  { %884 = vmatpush3.bf16.msra.mxu1 %v883_v1 }
 0x108   :  { %886 = vmatprep.subr.bf16.mxu1 %v885_v4 }
 0x10b   :  { %888 = vmatpush3.bf16.msra.mxu1 %v887_v8 }
 0x10c   :  { %913 = vmatprep.subr.bf16.mxu1 %v989_v6 }
 0x1c1   :  { %v188_v19 = vpop.f32.mrb[0].mxu1 }
 0x1c2   :  { %v189_v20 = vadd.f32 %v694_v18, %v188_v19  ;;  %v785_v21 = vpop.f32.mrb[1].mxu1  ;;  %v893_v19 = vpack.c.bf16 %v404_v17, %v403_v13 }
 0x1c3   :  { %v406_v21 = vld [vmem:[#allocation2 + $0x160] sm:$0xff] }
 0x1c4   :  { %v192_v22 = vmax.f32 %v189_v20, 0.0  ;;  %v405_v20 = vld [vmem:[#allocation2 + $0x158] sm:$0xff] }
 0x1c5   :  { %v896_v25 = vpack.c.bf16 %v406_v21, %v405_v20 }
 0x1c6   :  { %795 = vmatmul.mubr.msk.f32.vlgmr.msra.gmra.mrb[2].mxu0 %vm202_vm3, %v192_v22 }
 0x1c7   :  { %829 = vmatprep.mubr.msk.f32.mxu0 %vm988_vm0, %v987_v0  ;;  %891 = vmatpush3.bf16.msra.mxu0 %v890_v16 }
 0x1c8   :  { %892 = vmatprep.subr.bf16.mxu0 %v989_v6 }
 0x1cb   :  { %894 = vmatpush3.bf16.msra.mxu0 %v893_v19 }
 0x1cc   :  { %895 = vmatprep.subr.bf16.mxu0 %v989_v6 }
 0x1cf   :  { %897 = vmatpush3.bf16.msra.mxu0 %v896_v25 }
 0x1d0   :  { %898 = vmatprep.subr.bf16.mxu0 %v989_v6 }
 0x1d3   :  { %900 = vmatpush3.bf16.msra.mxu0 %v899_v28 }
 0x1d4   :  { %901 = vmatprep.subr.bf16.mxu0 %v989_v6 }
 0x1d7   :  { %903 = vmatpush3.bf16.msra.mxu0 %v902_v31 }
 0x1d8   :  { %904 = vmatprep.subr.bf16.mxu0 %v989_v6 }
 0x1db   :  { %906 = vmatpush3.bf16.msra.mxu0 %v905_v34 }
 0x1dc   :  { %907 = vmatprep.subr.bf16.mxu0 %v989_v6 }
 0x1df   :  { %909 = vmatpush3.bf16.msra.mxu0 %v908_v43 }
 0x1e0   :  { %910 = vmatprep.subr.bf16.mxu0 %v989_v6 }
 0x1e3   :  { %912 = vmatpush3.bf16.msra.mxu0 %v911_v46 }
 0x1e4   :  { %843 = vmatprep.subr.mxu0 %v987_v0 }
 0x299   :  { %v272_v10 = vpop.f32.mrb[2].mxu0 }
 0x29a   :  { %v273_v14 = vadd.f32 %v696_v9, %v272_v10  ;;  %v796_v15 = vpop.f32.mrb[3].mxu0  ;;  %v702_v9 = vld [vmem:[%s1094_s2 + $0x6] ss:$0 sm:$0xff] }
 0x29c   :  { %v276_v18 = vmax.f32 %v273_v14, 0.0 }
 0x29e   :  { %v278_v22 = vrot.slane %v276_v18, 2  ;;  %v284_v23 = vrot.slane %v276_v18, 6  ;;  %v282_v38 = vrot.slane %v276_v18, 4 }
 0x2a0   :  { %v927_v24 = vpack.i.bf16 %v278_v22, %v284_v23 }
 0x2a2   :  { %928 = vrot.lane.b32.xlu0 %v927_v24, %s990_s5 }
 0x314   :  { %v929_v35 = vpop.permute.xlu0 %928 }
 0x315   :  { %v931_v36 = vunpack.i.h.bf16 %v929_v35  ;;  %v930_v37 = vunpack.i.l.bf16 %v929_v35 }
 0x317   :  { %v290_v39 = vsel %vm288_vm4, %v282_v38, %v930_v37  ;;  %v289_v40 = vsel %vm288_vm4, %v276_v18, %v931_v36 }
 0x318   :  { %392 = vmatprep.mubr.f32.mxu1 %v290_v39 }
 0x319   :  { %393 = vmatmul.mubr.f32.vlgmr.msra.gmra.mrb[2].mxu1 %v289_v40 }
 0x31a   :  { %840 = vmatprep.mubr.msk.f32.mxu1 %vm988_vm0, %v987_v0  ;;  %915 = vmatpush3.bf16.msra.mxu1 %v914_v49 }
 0x31b   :  { %916 = vmatprep.subr.bf16.mxu1 %v989_v6  ;;  %v699_v6 = vld [vmem:[%s1094_s2 + $0x4] ss:$0 sm:$0xff] }
 0x31e   :  { %918 = vmatpush3.bf16.msra.mxu1 %v917_v59 }
 0x3ec   :  { %v747_v50 = vpop.f32.mrb[2].mxu1 }
 0x3ed   :  { %v748_v52 = vpop.f32.mrb[3].mxu1 }
 0x3ee   :  { %v749_v53 = vadd.f32 %v748_v52, %v747_v50 }
 0x3f0   :  { %v395_v54 = vadd.f32 %v749_v53, %v698_v51 }
 0x3f2   :  { %v399_v55 = vmul.f32 0.01, %v395_v54  ;;  %vm398_vm5 = vcmp.ge.f32.partialorder %v395_v54, 0.0 }
 0x3f4   :  { %v400_v56 = vsel %vm398_vm5, %v395_v54, %v399_v55 }
 0x3f5   :  { %830 = vmatmul.mubr.f32.vlgmr.msra.gmra.mrb[4].mxu0 %v400_v56 }
 0x3f6   :  { %845 = vmatprep.mubr.msk.f32.mxu0 %vm988_vm0, %v987_v0  ;;  %844 = vmatpush3.msk.msra.mxu0 %vm590_vm7, %v580_v2  ;;  %v700_v0 = vld [vmem:[%s1094_s2 + $0x5] ss:$0 sm:$0xff]  ;;  %s958_s2 = scalar_lea.vmem %s684_s15, 32 }
 0x3f7   :  { %p959_p8 = scmp.ne.s32.totalorder %s684_s15, %s958_s2  ;;  %p964_p10 = scmp.lt.s32.totalorder %s958_s2, %s958_s2 }
 0x3f9   :  { %p965_p11 = por %p964_p10, %p963_p9 }
 0x3fb   :  { %p966_p12 = pnand %p965_p11, %p959_p8 }
 0x4c8   :  { %v488_v60 = vpop.f32.mrb[4].mxu0 }
 0x4c9   :  { %v489_v61 = vadd.f32 %v699_v6, %v488_v60  ;;  %v831_v62 = vpop.f32.mrb[5].mxu0 }
 0x4cb   :  { %vm492_vm6 = vcmp.ge.f32.partialorder %v489_v61, 0.0  ;;  %v493_v63 = vmul.f32 0.01, %v489_v61 }
 0x4cd   :  { %v494_v1 = vsel %vm492_vm6, %v489_v61, %v493_v63 }
 0x4ce   :  { %841 = vmatmul.mubr.msk.f32.vlgmr.msra.gmra.mrb[4].mxu1 %vm202_vm3, %v494_v1 }
 0x5a1   :  { %v573_v3 = vpop.f32.mrb[4].mxu1 }
 0x5a2   :  { %v574_v4 = vadd.f32 %v700_v0, %v573_v3  ;;  %v842_v5 = vpop.f32.mrb[5].mxu1 }
 0x5a4   :  { %vm577_vm8 = vcmp.ge.f32.partialorder %v574_v4, 0.0  ;;  %v578_v7 = vmul.f32 0.01, %v574_v4 }
 0x5a6   :  { %v579_v8 = vsel %vm577_vm8, %v574_v4, %v578_v7 }
 0x5a7   :  { %846 = vmatmul.mubr.msk.f32.vlgmr.msra.gmra.mrb[6].mxu0 %vm586_vm9, %v579_v8 }
 0x67a   :  { %v660_v10 = vpop.f32.mrb[6].mxu0 }
 0x67b   :  { %v661_v11 = vadd.f32 %v702_v9, %v660_v10  ;;  %v847_v12 = vpop.f32.mrb[7].mxu0 }
 0x67d   :  { %v665_v13 = vsel %vm664_vm10, %v661_v11, -inf }
 0x67e   :  { %666 = vmax.xlane.f32.xlu0 %v665_v13 }
 0x70b   :  { %v667_v14 = vpop.xlane.xlu0 %666 }
 0x70c   :  { %v668_v15 = vsub.f32 %v661_v11, %v667_v14 }
 0x70e   :  { %v669_v16 = vmul.f32 1.442695, %v668_v15 }
 0x710   :  { %932 = vpow2.f32 %v669_v16 }
 0x71a   :  { %v933_v17 = vpop.eup %932 }
 0x71b   :  { %v671_v18 = vsel %vm664_vm10, %v933_v17, 0.0 }
 0x71c   :  { %672 = vadd.xlane.f32.xlu1 %v671_v18 }
 0x7a9   :  { %v673_v19 = vpop.xlane.xlu1 %672 }
 0x7aa   :  { %934 = vrcp.f32 %v673_v19 }
 0x7b4   :  { %v935_v20 = vpop.eup %934 }
 0x7b5   :  { %v675_v21 = vmul.f32 %v935_v20, %v933_v17 }
 0x7b7   :  { %676 = vst.msk [vmem:[#allocation5] sm:$0x3] %vm664_vm10, %v675_v21 }
 0x7b8   :  { %969 = shalt.err (!%p966_p12)
}
 0x7b9   :  { %s970_s18 = scalar_lea.hbm %s1095_s3, 32 }
 0x7ba   :  { %p971_p13 = scmp.ne.s32.totalorder %s1095_s3, %s970_s18  ;;  %p974_p0 = scmp.lt.u32.totalorder %s970_s18, %s1095_s3 }
 0x7bc   :  { %p976_p1 = pnand %p974_p0, %p971_p13 }
 0x7be   :  { %979 = shalt.err (!%p976_p1)
}
 0x7bf   :  { %686 = dma.vmem_to_hbm [thread:$0]  %s684_s15, 32, %s1095_s3, [#allocation4]  }
 0x7c0   :  { %982 = dma.done.wait [#allocation4], 32  }
 0x7c1   :  { %983 = vsyncadd [#allocation4], 4294967264 }
 0x7c2   :  { %690 = vsyncpa [#allocation3], 1 }
 0x7c3   :  { %691 = vsyncpa [#allocation4], 1 }

</bundles_post_ra>
